<compile_context>
chip_gen: v7x
topology: tpu7x:2x2x1
jax: 0.10.0
libtpu: 0.0.40
codegen_flags: <defaults>
</compile_context>

<pallas_src>
import jax
import jax.numpy as jnp
import numpy as np
from jax.experimental import pallas as pl
from jax.experimental.pallas import tpu as pltpu

SCALE_XY = 0.1
SCALE_WH = 0.2


def _round_up(x, m):
    return ((x + m - 1) // m) * m


def _postprocess_kernel(db_ref, bb_ref, sc_ref, box_ref, prob_ref):
    # db_ref  : (4, Ab)      default boxes (cx, cy, w, h), f32
    # bb_ref  : (Nb, 4, Ab)  box regression deltas (f32 or bf16)
    # sc_ref  : (Nb, C, Ab)  class logits (f32 or bf16)
    # box_ref : (Nb, 4, Ab)  decoded (l, t, r, b)
    # prob_ref: (Nb, C, Ab)  softmax over C
    #
    # NOTE: every op below is lane-independent — required for correctness with
    # un-padded edge blocks (OOB lanes hold garbage and are masked on store).
    db = db_ref[...]                     # f32 already
    xy_db = db[0:2, :]                   # (2, Ab)  (cx, cy)
    wh_db = db[2:4, :]                   # (2, Ab)  (w,  h)

    # Cast at the slice: no full-block f32 copy of the inputs in VMEM.
    bb_xy = bb_ref[:, 0:2, :].astype(jnp.float32)   # (Nb, 2, Ab)
    bb_wh = bb_ref[:, 2:4, :].astype(jnp.float32)   # (Nb, 2, Ab)

    xy = SCALE_XY * bb_xy * wh_db + xy_db            # (Nb, 2, Ab)
    wh = jnp.exp(SCALE_WH * bb_wh) * wh_db           # (Nb, 2, Ab)

    box_ref[:, 0:2, :] = (xy - 0.5 * wh).astype(box_ref.dtype)   # (l, t)
    box_ref[:, 2:4, :] = (xy + 0.5 * wh).astype(box_ref.dtype)   # (r, b)

    # Softmax over the class axis (sublane reduce; C is small).
    sc = sc_ref[...]                                  # input dtype
    m = jnp.max(sc, axis=1, keepdims=True)            # max in input dtype
    e = jnp.exp((sc - m).astype(jnp.float32))         # upcast at the exp
    denom = jnp.sum(e, axis=1, keepdims=True)
    inv = pl.reciprocal(denom, approx=True)    # EUP vrcp (co-issues with VPU)
    inv = inv * (2.0 - denom * inv)            # one Newton step -> ~f32 accuracy
    prob_ref[...] = (e * inv).astype(prob_ref.dtype)


def _sublane_tile(itemsize):
    # rows per 32-bit sublane group: 8 for f32, 16 for bf16, 32 for int8.
    return max(8, 32 // int(itemsize))


def _vmem_bytes_per_step(Nb, Ab, C, in_itemsize, out_itemsize):
    """Estimate VMEM bytes for one grid step, including sublane padding,
    double-buffered pipeline buffers, f32 compute temporaries and headroom."""
    Ab128 = _round_up(Ab, 128)
    st_in = _sublane_tile(in_itemsize)
    st_out = _sublane_tile(out_itemsize)
    rows_in = _round_up(4, st_in) + _round_up(C, st_in)
    rows_out = _round_up(4, st_out) + _round_up(C, st_out)
    # BlockSpec pipeline double-buffers every input/output block (+ dboxes).
    buffered = 2 * Ab128 * (Nb * (rows_in * in_itemsize + rows_out * out_itemsize)
                            + _round_up(4, 8) * 4)
    # in-kernel f32 temporaries (softmax numerator, xy/wh slabs), single-buffered
    temps = Nb * Ab128 * (_round_up(C, 8) + 2 * _round_up(2, 8)) * 4
    return int(1.25 * (buffered + temps))


def _tpu_vmem_capacity_bytes():
    try:
        return int(pltpu.get_tpu_info().vmem_capacity_bytes)
    except Exception:
        return 64 * 1024 * 1024   # conservative (v7x-sized) fallback


def _choose_tiling(N, A, C, in_itemsize, out_itemsize, budget_bytes):
    """Pick (Nb, Ab). Prefers the whole anchor axis in one block (full-extent
    last dim satisfies the (8,128) rule even when A % 128 != 0), grows Nb up
    to the budget, and guarantees >=2 grid steps when possible so the grid
    can be sharded across 2 TensorCores on v7x."""
    A128 = _round_up(A, 128)

    def fits(nb, ab):
        return _vmem_bytes_per_step(nb, ab, C, in_itemsize, out_itemsize) <= budget_bytes

    if fits(1, A):
        Ab = A                       # full anchor extent, no padding needed
        Nb = 1
        while Nb < N and Nb < 512 and fits(Nb + 1, A):
            Nb += 1
        if Nb >= N:
            # Whole batch would fit one step: split so >=2 grid steps exist
            # (negligible per-step overhead, enables 2-TC sharding on v7x).
            if N >= 2:
                Nb = -(-N // 2)                       # ceil(N / 2)
            elif A128 >= 256:
                Ab = _round_up(-(-A // 2), 128)       # split anchors instead
        else:
            steps = -(-N // Nb)
            Nb = -(-N // steps)                       # balance image blocks
    else:
        # One image per step, anchor axis chunked in 128-lane multiples;
        # edge block (if A % Ab != 0) is handled by Pallas masking.
        Nb = 1
        Ab = 128
        while Ab + 128 <= A128 and fits(1, Ab + 128):
            Ab += 128
        Ab = min(Ab, A128)
    return Nb, Ab


def scale_back_batch_pallas(bboxes_in, scores_in, dboxes_xywh, *,
                            out_dtype=None, transpose_outputs=False,
                            _budget_bytes=None):
    """bboxes_in: [N, 4, A] (f32 or bf16), scores_in: [N, C, A] (f32 or bf16),
    dboxes_xywh: [A, 4].

    Default return is lane-dense (boxes [N, 4, A], probs [N, C, A]) — the
    layout the kernel writes, avoiding an extra HBM round trip.  Pass
    transpose_outputs=True for the PyTorch scale_back_batch convention
    ([N, A, 4], [N, A, C]).  out_dtype defaults to the bboxes_in dtype
    (bf16 in -> bf16 out, halving output HBM traffic)."""
    N, four, A = bboxes_in.shape
    assert four == 4
    C = scores_in.shape[1]

    if out_dtype is None:
        out_dtype = bboxes_in.dtype
    in_itemsize = max(jnp.dtype(bboxes_in.dtype).itemsize,
                      jnp.dtype(scores_in.dtype).itemsize)
    out_itemsize = jnp.dtype(out_dtype).itemsize

    # Generation-aware VMEM budget: v5e/v6e have 128 MiB physical VMEM,
    # v7x only 64 MiB — don't reuse the big-chip budget there.
    vmem_cap = _tpu_vmem_capacity_bytes()
    if vmem_cap >= 100 * 1024 * 1024:          # v5e / v6e
        budget, vmem_limit = 48 * 1024 * 1024, 96 * 1024 * 1024
    else:                                      # v7x
        budget, vmem_limit = 24 * 1024 * 1024, 48 * 1024 * 1024
    if _budget_bytes is not None:              # test hook
        budget = int(_budget_bytes)

    Nb, Ab = _choose_tiling(N, A, C, in_itemsize, out_itemsize, budget)

    dboxes_t = jnp.asarray(dboxes_xywh, jnp.float32).T  # (4, A), tiny

    # Anchor-chunk axis OUTERMOST, image axis innermost: the dboxes block
    # index (0, a) is constant across consecutive steps -> not re-fetched.
    grid = (pl.cdiv(A, Ab), pl.cdiv(N, Nb))

    boxes_nca, probs_nca = pl.pallas_call(
        _postprocess_kernel,
        out_shape=(
            jax.ShapeDtypeStruct((N, 4, A), out_dtype),
            jax.ShapeDtypeStruct((N, C, A), out_dtype),
        ),
        grid_spec=pltpu.PrefetchScalarGridSpec(
            num_scalar_prefetch=0,
            grid=grid,
            in_specs=[
                pl.BlockSpec((4, Ab), lambda a, n: (0, a)),          # default boxes
                pl.BlockSpec((Nb, 4, Ab), lambda a, n: (n, 0, a)),   # deltas
                pl.BlockSpec((Nb, C, Ab), lambda a, n: (n, 0, a)),   # logits
            ],
            out_specs=[
                pl.BlockSpec((Nb, 4, Ab), lambda a, n: (n, 0, a)),
                pl.BlockSpec((Nb, C, Ab), lambda a, n: (n, 0, a)),
            ],
        ),
        compiler_params=pltpu.CompilerParams(
            dimension_semantics=("parallel", "parallel"),
            vmem_limit_bytes=vmem_limit,
        ),
    )(dboxes_t, bboxes_in, scores_in)

    if transpose_outputs:
        # Exact PyTorch scale_back_batch return layout (extra HBM round trip —
        # keep transpose_outputs=False and consume [N, C, A] downstream when possible).
        return (jnp.transpose(boxes_nca, (0, 2, 1)),
                jnp.transpose(probs_nca, (0, 2, 1)))
    return boxes_nca, probs_nca


def _reference(bboxes_in, scores_in, dboxes_xywh):
    bb = jnp.transpose(bboxes_in, (0, 2, 1)).astype(jnp.float32)  # [N, A, 4]
    sc = jnp.transpose(scores_in, (0, 2, 1)).astype(jnp.float32)  # [N, A, C]
    db = jnp.asarray(dboxes_xywh, jnp.float32)[None]              # [1, A, 4]
    xy = SCALE_XY * bb[:, :, :2]
    wh = SCALE_WH * bb[:, :, 2:]
    xy = xy * db[:, :, 2:] + db[:, :, :2]
    wh = jnp.exp(wh) * db[:, :, 2:]
    l = xy[:, :, 0] - 0.5 * wh[:, :, 0]
    t = xy[:, :, 1] - 0.5 * wh[:, :, 1]
    r = xy[:, :, 0] + 0.5 * wh[:, :, 0]
    b = xy[:, :, 1] + 0.5 * wh[:, :, 1]
    boxes = jnp.stack([l, t, r, b], axis=-1)
    probs = jax.nn.softmax(sc, axis=-1)
    return boxes, probs


def make_default_boxes(num_anchors):
    """Deterministic synthetic default boxes in xywh (normalized) format."""
    i = np.arange(num_anchors, dtype=np.float32)
    cx = (i % 19 + 0.5) / 19.0
    cy = ((i // 19) % 19 + 0.5) / 19.0
    w = 0.08 + 0.05 * ((i % 7) / 7.0)
    h = 0.06 + 0.05 * ((i % 5) / 5.0)
    return np.stack([cx, cy, w, h], axis=-1).astype(np.float32)   # [A, 4]


if __name__ == "__main__":
    key = jax.random.PRNGKey(0)
    k1, k2, k3, k4 = jax.random.split(key, 4)

    # small shapes consistent with the module: batch=2, num_anchors=256, classes=8
    N, A, C = 2, 256, 8
    bboxes_in = jax.random.normal(k1, (N, 4, A), dtype=jnp.float32)   # [N, 4, A]
    scores_in = jax.random.normal(k2, (N, C, A), dtype=jnp.float32)   # [N, C, A]
    dboxes_xywh = make_default_boxes(A)                               # [A, 4]

    ref_boxes, ref_probs = _reference(bboxes_in, scores_in, dboxes_xywh)
    ref_boxes_nca = np.transpose(np.asarray(ref_boxes), (0, 2, 1))
    ref_probs_nca = np.transpose(np.asarray(ref_probs), (0, 2, 1))

    # 1) default lane-dense path (no output transpose), f32 inputs -> f32 out
    boxes_nca, probs_nca = scale_back_batch_pallas(bboxes_in, scores_in, dboxes_xywh)
    jax.block_until_ready((boxes_nca, probs_nca))
    np.testing.assert_allclose(np.asarray(boxes_nca), ref_boxes_nca,
                               rtol=1e-5, atol=1e-5)
    np.testing.assert_allclose(np.asarray(probs_nca), ref_probs_nca,
                               rtol=1e-5, atol=1e-5)

    # 2) PyTorch-convention layout on request (matches module semantics exactly)
    boxes_nac, probs_nac = scale_back_batch_pallas(
        bboxes_in, scores_in, dboxes_xywh, transpose_outputs=True)
    jax.block_until_ready((boxes_nac, probs_nac))
    np.testing.assert_allclose(np.asarray(boxes_nac), np.asarray(ref_boxes),
                               rtol=1e-5, atol=1e-5)
    np.testing.assert_allclose(np.asarray(probs_nac), np.asarray(ref_probs),
                               rtol=1e-5, atol=1e-5)

    # 3) bf16 inputs: no wrapper up-cast, bf16 outputs by default (half traffic)
    boxes_bf, probs_bf = scale_back_batch_pallas(
        bboxes_in.astype(jnp.bfloat16), scores_in.astype(jnp.bfloat16), dboxes_xywh)
    jax.block_until_ready((boxes_bf, probs_bf))
    np.testing.assert_allclose(np.asarray(boxes_bf, dtype=np.float32), ref_boxes_nca,
                               rtol=0, atol=3e-2)
    np.testing.assert_allclose(np.asarray(probs_bf, dtype=np.float32), ref_probs_nca,
                               rtol=0, atol=5e-2)

    # 4) A not a multiple of 128 and odd batch: no wrapper padding.
    #    (a) full-extent anchor block; (b) tiny budget forces 128-lane anchor
    #    chunks with masked edge blocks on both grid axes.
    N2, A2, C2 = 3, 300, 5
    bboxes2 = jax.random.normal(k3, (N2, 4, A2), dtype=jnp.float32)
    scores2 = jax.random.normal(k4, (N2, C2, A2), dtype=jnp.float32)
    dboxes2 = make_default_boxes(A2)
    ref_b2, ref_p2 = _reference(bboxes2, scores2, dboxes2)
    ref_b2_nca = np.transpose(np.asarray(ref_b2), (0, 2, 1))
    ref_p2_nca = np.transpose(np.asarray(ref_p2), (0, 2, 1))

    b2, p2 = scale_back_batch_pallas(bboxes2, scores2, dboxes2)
    jax.block_until_ready((b2, p2))
    np.testing.assert_allclose(np.asarray(b2), ref_b2_nca, rtol=1e-5, atol=1e-5)
    np.testing.assert_allclose(np.asarray(p2), ref_p2_nca, rtol=1e-5, atol=1e-5)

    b2e, p2e = scale_back_batch_pallas(bboxes2, scores2, dboxes2,
                                       _budget_bytes=128 * 1024)
    jax.block_until_ready((b2e, p2e))
    np.testing.assert_allclose(np.asarray(b2e), ref_b2_nca, rtol=1e-5, atol=1e-5)
    np.testing.assert_allclose(np.asarray(p2e), ref_p2_nca, rtol=1e-5, atol=1e-5)

    print("KERNEL_OK")
</pallas_src>

<mosaic_0001>
module attributes {stable_mosaic.version = 11 : i64} {
  func.func @_postprocess_kernel(%arg0: i32, %arg1: i32, %arg2: memref<4x256xf32, #tpu.memory_space<vmem>>, %arg3: memref<1x4x256xf32, #tpu.memory_space<vmem>>, %arg4: memref<1x8x256xf32, #tpu.memory_space<vmem>>, %arg5: memref<1x4x256xf32, #tpu.memory_space<vmem>>, %arg6: memref<1x8x256xf32, #tpu.memory_space<vmem>>) attributes {dimension_semantics = [#tpu.dimension_semantics<parallel>, #tpu.dimension_semantics<parallel>], iteration_bounds = array<i64: 1, 2>, scalar_prefetch = 0 : i64, scratch_operands = 0 : i64, tpu.core_type = #tpu.core_type<tc>, window_params = [{transform_indices = @transform_0, window_bounds = array<i64: 4, 256>}, {transform_indices = @transform_1, window_bounds = array<i64: 1, 4, 256>}, {transform_indices = @transform_2, window_bounds = array<i64: 1, 8, 256>}, {transform_indices = @transform_3, window_bounds = array<i64: 1, 4, 256>}, {transform_indices = @transform_4, window_bounds = array<i64: 1, 8, 256>}]} {
    %c0 = arith.constant 0 : index
    %c0_0 = arith.constant 0 : index
    %0 = vector.load %arg2[%c0, %c0_0] : memref<4x256xf32, #tpu.memory_space<vmem>>, vector<4x256xf32>
    %1 = vector.extract_strided_slice %0 {offsets = [0, 0], sizes = [2, 256], strides = [1, 1]} : vector<4x256xf32> to vector<2x256xf32>
    %2 = vector.extract_strided_slice %0 {offsets = [2, 0], sizes = [2, 256], strides = [1, 1]} : vector<4x256xf32> to vector<2x256xf32>
    %c0_1 = arith.constant 0 : index
    %c0_2 = arith.constant 0 : index
    %c0_3 = arith.constant 0 : index
    %3 = vector.load %arg3[%c0_1, %c0_2, %c0_3] : memref<1x4x256xf32, #tpu.memory_space<vmem>>, vector<1x2x256xf32>
    %c0_4 = arith.constant 0 : index
    %c2 = arith.constant 2 : index
    %c0_5 = arith.constant 0 : index
    %4 = vector.load %arg3[%c0_4, %c2, %c0_5] : memref<1x4x256xf32, #tpu.memory_space<vmem>>, vector<1x2x256xf32>
    %cst = arith.constant 1.000000e-01 : f32
    %5 = vector.broadcast %cst : f32 to vector<1x2x256xf32>
    %6 = arith.mulf %5, %3 : vector<1x2x256xf32>
    %7 = vector.shape_cast %2 : vector<2x256xf32> to vector<1x2x256xf32>
    %8 = arith.mulf %6, %7 : vector<1x2x256xf32>
    %9 = vector.shape_cast %1 : vector<2x256xf32> to vector<1x2x256xf32>
    %10 = arith.addf %8, %9 : vector<1x2x256xf32>
    %cst_6 = arith.constant 2.000000e-01 : f32
    %11 = vector.broadcast %cst_6 : f32 to vector<1x2x256xf32>
    %12 = arith.mulf %11, %4 : vector<1x2x256xf32>
    %13 = math.exp %12 : vector<1x2x256xf32>
    %14 = vector.shape_cast %2 : vector<2x256xf32> to vector<1x2x256xf32>
    %15 = arith.mulf %13, %14 : vector<1x2x256xf32>
    %cst_7 = arith.constant 5.000000e-01 : f32
    %16 = vector.broadcast %cst_7 : f32 to vector<1x2x256xf32>
    %17 = arith.mulf %16, %15 : vector<1x2x256xf32>
    %18 = arith.subf %10, %17 : vector<1x2x256xf32>
    %c0_8 = arith.constant 0 : index
    %c0_9 = arith.constant 0 : index
    %c0_10 = arith.constant 0 : index
    %19 = vector.load %arg5[%c0_8, %c0_9, %c0_10] : memref<1x4x256xf32, #tpu.memory_space<vmem>>, vector<1x2x256xf32>
    tpu.vector_store %arg5[%c0_8, %c0_9, %c0_10], %18 {strides = array<i32>} : memref<1x4x256xf32, #tpu.memory_space<vmem>>, vector<1x2x256xf32>,
    %cst_11 = arith.constant 5.000000e-01 : f32
    %20 = vector.broadcast %cst_11 : f32 to vector<1x2x256xf32>
    %21 = arith.mulf %20, %15 : vector<1x2x256xf32>
    %22 = arith.addf %10, %21 : vector<1x2x256xf32>
    %c0_12 = arith.constant 0 : index
    %c2_13 = arith.constant 2 : index
    %c0_14 = arith.constant 0 : index
    %23 = vector.load %arg5[%c0_12, %c2_13, %c0_14] : memref<1x4x256xf32, #tpu.memory_space<vmem>>, vector<1x2x256xf32>
    tpu.vector_store %arg5[%c0_12, %c2_13, %c0_14], %22 {strides = array<i32>} : memref<1x4x256xf32, #tpu.memory_space<vmem>>, vector<1x2x256xf32>,
    %c0_15 = arith.constant 0 : index
    %c0_16 = arith.constant 0 : index
    %c0_17 = arith.constant 0 : index
    %24 = vector.load %arg4[%c0_15, %c0_16, %c0_17] : memref<1x8x256xf32, #tpu.memory_space<vmem>>, vector<1x8x256xf32>
    %cst_18 = arith.constant dense<0xFF800000> : vector<1x256xf32>
    %25 = vector.multi_reduction <maximumf>, %24, %cst_18 [1] : vector<1x8x256xf32> to vector<1x256xf32>
    %26 = vector.shape_cast %25 : vector<1x256xf32> to vector<1x1x256xf32>
    %27 = vector.broadcast %26 : vector<1x1x256xf32> to vector<1x8x256xf32>
    %28 = arith.subf %24, %27 : vector<1x8x256xf32>
    %29 = math.exp %28 : vector<1x8x256xf32>
    %cst_19 = arith.constant dense<0.000000e+00> : vector<1x256xf32>
    %30 = vector.multi_reduction <add>, %29, %cst_19 [1] : vector<1x8x256xf32> to vector<1x256xf32>
    %31 = vector.shape_cast %30 : vector<1x256xf32> to vector<1x1x256xf32>
    %32 = tpu.reciprocal %31 {approx = true} : vector<1x1x256xf32> -> vector<1x1x256xf32>
    %33 = arith.mulf %31, %32 : vector<1x1x256xf32>
    %cst_20 = arith.constant 2.000000e+00 : f32
    %34 = vector.broadcast %cst_20 : f32 to vector<1x1x256xf32>
    %35 = arith.subf %34, %33 : vector<1x1x256xf32>
    %36 = arith.mulf %32, %35 : vector<1x1x256xf32>
    %37 = vector.broadcast %36 : vector<1x1x256xf32> to vector<1x8x256xf32>
    %38 = arith.mulf %29, %37 : vector<1x8x256xf32>
    %c0_21 = arith.constant 0 : index
    %c0_22 = arith.constant 0 : index
    %c0_23 = arith.constant 0 : index
    %39 = vector.load %arg6[%c0_21, %c0_22, %c0_23] : memref<1x8x256xf32, #tpu.memory_space<vmem>>, vector<1x8x256xf32>
    tpu.vector_store %arg6[%c0_21, %c0_22, %c0_23], %38 {strides = array<i32>} : memref<1x8x256xf32, #tpu.memory_space<vmem>>, vector<1x8x256xf32>,
    return
  }
  func.func @transform_0(%arg0: i32, %arg1: i32) -> (i32, i32) {
    %c0_i32 = arith.constant 0 : i32
    %c0_i32_0 = arith.constant 0 : i32
    return %c0_i32, %arg0 : i32, i32
  }
  func.func @transform_1(%arg0: i32, %arg1: i32) -> (i32, i32, i32) {
    %c0_i32 = arith.constant 0 : i32
    %c0_i32_0 = arith.constant 0 : i32
    return %arg1, %c0_i32, %arg0 : i32, i32, i32
  }
  func.func @transform_2(%arg0: i32, %arg1: i32) -> (i32, i32, i32) {
    %c0_i32 = arith.constant 0 : i32
    %c0_i32_0 = arith.constant 0 : i32
    return %arg1, %c0_i32, %arg0 : i32, i32, i32
  }
  func.func @transform_3(%arg0: i32, %arg1: i32) -> (i32, i32, i32) {
    %c0_i32 = arith.constant 0 : i32
    %c0_i32_0 = arith.constant 0 : i32
    return %arg1, %c0_i32, %arg0 : i32, i32, i32
  }
  func.func @transform_4(%arg0: i32, %arg1: i32) -> (i32, i32, i32) {
    %c0_i32 = arith.constant 0 : i32
    %c0_i32_0 = arith.constant 0 : i32
    return %arg1, %c0_i32, %arg0 : i32, i32, i32
  }
}

</mosaic_0001>

<bundles_post_ra>
// kernel: tpu_custom_call.1
= control target key start
LH: loop header
LB: loop body
LE: loop exit
PB: predicated region body
PF: predicated region fallthrough
CT: control target
= control target key end

     0   :  { %s1222_s0 = inlined_call_operand.hbm [shape: f32[4,256], index: 0, kind: input, shape index: {}]   ;;  %s1223_s1 = inlined_call_operand.hbm [shape: f32[2,4,256], index: 1, kind: input, shape index: {}]   ;;  %s1224_s2 = inlined_call_operand.hbm [shape: f32[2,8,256], index: 2, kind: input, shape index: {}]   ;;  %s1225_s3 = inlined_call_operand.hbm [shape: f32[2,4,256], index: 3, kind: output, shape index: {0}]   ;;  %s1226_s4 = inlined_call_operand.hbm [shape: f32[2,8,256], index: 4, kind: output, shape index: {1}]  }
   0x1   :  { %1232 = sst [smem:[#allocation15_spill]] %s1223_s1 }
   0x2   :  { %1233 = sst [smem:[#allocation16_spill]] %s1224_s2 }
   0x3   :  { %10 = vsyncpa [#allocation3], 0 }
   0x4   :  { %11 = vsyncpa [#allocation6], 0 }
   0x5   :  { %13 = vsyncpa [#allocation6 + $0x1], 0 }
   0x6   :  { %14 = vsyncpa [#allocation4], 0 }
   0x7   :  { %16 = vsyncpa [#allocation4 + $0x1], 0 }
   0x8   :  { %17 = vsyncpa [#allocation10], 0 }
   0x9   :  { %19 = vsyncpa [#allocation10 + $0x1], 0  ;;  %s935_s15 = smov 0   ;;  %s937_s16 = smov 0  }
   0xa   :  { %s939_s17 = smov 0   ;;  %s941_s18 = smov 0  }
   0xb   :  { %s943_s19 = smov 0   ;;  %s945_s20 = smov 0  }
   0xc LB: > { %s34_s21 = sadd.s32 1, %s899_s19  ;;  %s72_s22 = sadd.s32 1, %s891_s17  ;;  %s903_s20 = sphi %s945_s20, %s25_s20   ;;  %s899_s19 = sphi %s943_s19, %s1254_s19   ;;  %s895_s18 = sphi %s941_s18, %s1253_s18   ;;  %s891_s17 = sphi %s939_s17, %s1252_s17   ;;  %s887_s16 = sphi %s937_s16, %s1251_s16   ;;  %s883_s15 = sphi %s935_s15, %s1250_s15  }
   0xd   : > { %p35_p0 = scmp.ge.s32.totalorder %s34_s21, 2  ;;  %p79_p1 = scmp.ne.s32.totalorder %s891_s17, %s887_s16 }
   0xe   : > { %p80_p2 = scmp.eq.s32.totalorder %s903_s20, 0  ;;  %p635_p5 = scmp.lt.s32.totalorder %s903_s20, 2 }
   0xf   : > { %s1256_s21 = smov (%p35_p0, %s34_s21), 0  ;;  %s207_s24 = sand.u32 1, %s903_s20  }
  0x10   : > { %p81_p4 = por %p80_p2, %p79_p1  ;;  %s67_s23 = ssub.s32 %s899_s19, %s1256_s21 }
  0x11   : > { %p70_p6 = scmp.eq.s32.totalorder %s67_s23, 0  ;;  %s209_s25 = sand.u32 1, %s891_s17  }
  0x12   : > { %s600_s26 = sshll.u32 %s899_s19, 7  ;;  %s579_s28 = sshll.u32 %s209_s25, 3 }
  0x13   : > { %s983_s27 = scalar_select %p70_p6, %s891_s17, %s72_s22  }
  0x14   : > { %s1234_s1 = sld [smem:[#allocation15_spill]]  ;;  %p990_p7 = pnand %p635_p5, %p81_p4 }
  0x15   : > { %s211_s7 = scalar_lea.vmem [#allocation5], %s579_s28  ;;  %s994_s9 = sshll.u32 %s209_s25, 4 }
  0x16   : > { %s221_s8 = sshll.u32 %s211_s7, 4  ;;  %s998_s10 = scalar_lea.sflag [#allocation6], %s207_s24  ;;  %s996_s8 = int_to_ptr.vmem [resolvable:$true] %s221_s8 }
  0x17   : > { %p699_p9 = pneg %p990_p7 }
  0x1a   : > { %s988_s5 = scalar_lea.hbm %s1234_s1, %s600_s26  ;;  %s702_s14 = scalar_lea.hbm %s1234_s1, 256 }
  0x1b   : > { %s697_s11 = scalar_lea.hbm %s988_s5, 128  ;;  %p703_p12 = scmp.lt.u32.totalorder %s988_s5, %s1234_s1 }
  0x1c   : > { %p698_p8 = scmp.ne.s32.totalorder %s988_s5, %s697_s11  ;;  %p704_p13 = scmp.lt.u32.totalorder %s702_s14, %s697_s11 }
  0x1d   : > { %p706_p2 = scmp.lt.u32.totalorder %s697_s11, %s988_s5 }
  0x1e   : > { %p700_p10 = pnand %p699_p9, %p698_p8  ;;  %p705_p0 = por %p704_p13, %p703_p12 }
  0x20   : > { %p701_p11 = pneg %p700_p10  ;;  %p707_p4 = por %p706_p2, %p705_p0 }
  0x22   : > { %p708_p5 = pnand %p707_p4, %p701_p11 }
  0x24   : > { %711 = shalt.err (!%p708_p5)
}
  0x25   : > { %s712_s24 = scalar_lea.vmem %s996_s8, 128  ;;  %s905_s25 = smov [#allocation5]  }
  0x26   : > { %p713_p6 = scmp.ne.s32.totalorder %s996_s8, %s712_s24  ;;  %s717_s26 = sshll.u32 %s905_s25, 4  ;;  %s718_s26 = int_to_ptr.vmem [resolvable:$false] %s717_s26 }
  0x27   : > { %s719_s28 = scalar_lea.vmem %s718_s26, 256  ;;  %p720_p3 = scmp.lt.s32.totalorder %s996_s8, %s718_s26 }
  0x28   : > { %p715_p8 = pnand %p713_p6, %p699_p9  ;;  %p721_p12 = scmp.lt.s32.totalorder %s719_s28, %s712_s24 }
  0x2a   : > { %p716_p10 = pneg %p715_p8  ;;  %p722_p13 = por %p721_p12, %p720_p3 }
  0x2c   : > { %p723_p0 = pnand %p722_p13, %p716_p10 }
  0x2e   : > { %726 = shalt.err (!%p723_p0)
}
  0x2f   : > { %623 = dma.hbm_to_vmem [thread:$0]  (!%p990_p7), %s988_s5, 128, %s996_s8, %s998_s10  }
  0x30   : > { %s1027_s29 = sadd.s32 4294967295, %s903_s20   ;;  %s575_s30 = sadd.s32 4294967294, %s903_s20  }
  0x31   : > { %p85_p3 = scmp.ne.s32.totalorder %s887_s16, %s883_s15  ;;  %p1227_p11 = scmp.eq.s32.totalorder %s1027_s29, 0 }
  0x32   : > { %p139_p2 = scmp.eq.s32.totalorder %s1027_s29, 1  ;;  %p145_p4 = scmp.eq.s32.totalorder %s575_s30, 1 }
  0x33   : > { %p1036_p5 = por %p1227_p11, %p85_p3  ;;  %p576_p6 = scmp.ge.s32.totalorder %s903_s20, 1 }
  0x34   : > { %p1044_p8 = por %p139_p2, %p79_p1  ;;  %p1048_p10 = por %p145_p4, %p85_p3 }
  0x35   : > { %s1236_s7 = scalar_select %p1036_p5, 1, 0 }
  0x36   : > { %s1237_s5 = scalar_select %p1044_p8, 1, 0 }
  0x37   : > { %s1238_s8 = scalar_select %p1048_p10, 1, 0 }
  0x38   : > { %p180_p12 = scmp.lt.s32.totalorder %s903_s20, 3  ;;  %s906_s12 = smov [#allocation2]  }
  0x39   : > { %s196_s13 = sshll.u32 %s906_s12, 4  ;;  %s601_s14 = sshll.u32 %s899_s19, 8  ;;  %s1065_s13 = int_to_ptr.vmem [resolvable:$true] %s196_s13 }
  0x3a   : > { %p1053_p13 = pnand %p576_p6, %p180_p12  ;;  %s1240_s2 = sld [smem:[#allocation16_spill]] }
  0x3b   : > { %s232_s25 = scalar_lea.vmem [#allocation7], %s994_s9 }
  0x3c   : > { %s1239_s11 = scalar_select %p1053_p13, 1, 0 }
  0x3d   : > { %p616_p0 = pneg %p1053_p13  ;;  %s242_s26 = sshll.u32 %s232_s25, 4  ;;  %s243_s26 = int_to_ptr.vmem [resolvable:$true] %s242_s26 }
  0x3f   : > { %p1070_p1 = pnand %p616_p0, %p1227_p11 }
  0x40   : > { %s1063_s24 = scalar_lea.hbm %s1240_s2, %s601_s14  ;;  %s732_s22 = scalar_lea.hbm %s1240_s2, 512 }
  0x41   : > { %s1241_s28 = scalar_select %p1070_p1, 1, 0 }
  0x42   : > { %s727_s30 = scalar_lea.hbm %s1063_s24, 256  ;;  %p733_p6 = scmp.lt.u32.totalorder %s1063_s24, %s1240_s2 }
  0x43   : > { %p728_p3 = scmp.ne.s32.totalorder %s1063_s24, %s727_s30  ;;  %p734_p12 = scmp.lt.u32.totalorder %s732_s22, %s727_s30 }
  0x44   : > { %p736_p11 = scmp.lt.u32.totalorder %s727_s30, %s1063_s24 }
  0x45   : > { %p730_p2 = pnand %p728_p3, %p699_p9  ;;  %p735_p0 = por %p734_p12, %p733_p6 }
  0x47   : > { %p731_p4 = pneg %p730_p2  ;;  %p737_p10 = por %p736_p11, %p735_p0 }
  0x49   : > { %p738_p8 = pnand %p737_p10, %p731_p4 }
  0x4b   : > { %741 = shalt.err (!%p738_p8)
}
  0x4c   : > { %s742_s9 = scalar_lea.vmem %s243_s26, 256  ;;  %s907_s25 = smov [#allocation7]  }
  0x4d   : > { %p743_p5 = scmp.ne.s32.totalorder %s243_s26, %s742_s9  ;;  %s747_s12 = sshll.u32 %s907_s25, 4  ;;  %s748_s12 = int_to_ptr.vmem [resolvable:$false] %s747_s12 }
  0x4e   : > { %s749_s14 = scalar_lea.vmem %s748_s12, 512  ;;  %p750_p13 = scmp.lt.s32.totalorder %s243_s26, %s748_s12 }
  0x4f   : > { %p745_p3 = pnand %p743_p5, %p699_p9  ;;  %p751_p1 = scmp.lt.s32.totalorder %s749_s14, %s742_s9 }
  0x51   : > { %p746_p2 = pneg %p745_p3  ;;  %p752_p6 = por %p751_p1, %p750_p13 }
  0x53   : > { %p753_p12 = pnand %p752_p6, %p746_p2 }
  0x55   : > { %756 = shalt.err (!%p753_p12)
}
  0x56   : > { %626 = dma.hbm_to_vmem [thread:$0]  (!%p990_p7), %s1063_s24, 256, %s243_s26, %s998_s10  }
  0x57   : > { %s757_s22 = scalar_lea.hbm %s1222_s0, 128  ;;  %p1242_p11 = scmp.ne.s32.totalorder %s1241_s28, 0 }
  0x58   : > { %p758_p9 = scmp.ne.s32.totalorder %s1222_s0, %s757_s22  ;;  %p764_p13 = scmp.lt.u32.totalorder %s757_s22, %s1222_s0 }
  0x59   : > { %p759_p5 = pneg %p1242_p11 }
  0x5b   : > { %p760_p8 = pnand %p759_p5, %p758_p9 }
  0x5d   : > { %p761_p10 = pneg %p760_p8 }
  0x5f   : > { %p766_p1 = pnand %p764_p13, %p761_p10 }
  0x61   : > { %769 = shalt.err (!%p766_p1)
}
  0x62   : > { %s770_s6 = scalar_lea.vmem %s1065_s13, 128  ;;  %p778_p3 = scmp.lt.s32.totalorder %s1065_s13, %s1065_s13 }
  0x63   : > { %p771_p7 = scmp.ne.s32.totalorder %s1065_s13, %s770_s6  ;;  %p779_p2 = scmp.lt.s32.totalorder %s770_s6, %s770_s6 }
  0x65   : > { %p773_p4 = pnand %p771_p7, %p759_p5  ;;  %p780_p6 = por %p779_p2, %p778_p3 }
  0x67   : > { %p774_p0 = pneg %p773_p4 }
  0x69   : > { %p781_p12 = pnand %p780_p6, %p774_p0 }
  0x6b   : > { %784 = shalt.err (!%p781_p12)
}
  0x6c   : > { %619 = dma.hbm_to_vmem [thread:$0]  (!%p1242_p11), %s1222_s0, 128, %s1065_s13, [#allocation3]  }
  0x6d   : > { %p1243_p9 = scmp.ne.s32.totalorder %s1239_s11, 0 }
  0x6e   : > { %p1244_p8 = scmp.eq.s32.totalorder (!%p1243_p9), %s1027_s29, 0 }
  0x6f   : > { %251 = sbr.rel (%p1243_p9) target bundleno = 212 (0xd4), region = 32 }
  0x76   : > { %866 = dma.done.wait (%p1244_p8), [#allocation3], 128   ;;  %p1245_p5 = pmov %p1244_p8 }
  0x77   : > { %s257_s24 = sand.u32 1, %s1027_s29   ;;  %s1123_s26 = sand.u32 1, %s887_s16  }
  0x78   : > { %868 = vsyncadd (%p1245_p5), [#allocation3], 4294967168  ;;  %s587_s28 = sshll.u32 %s1123_s26, 3  ;;  %s258_s12 = scalar_lea.sflag [#allocation6], %s257_s24 }
  0x79   : > { %s261_s13 = scalar_lea.vmem [#allocation5], %s587_s28  ;;  %p1246_p11 = scmp.ne.s32.totalorder %s1236_s7, 0 }
  0x7b   : > { %870 = dma.done.wait (%p1246_p11), %s258_s12, 384  }
  0x7c   : > { %872 = vsyncadd (%p1246_p11), %s258_s12, 4294966912  ;;  %s588_s11 = sshll.u32 %s1123_s26, 4  ;;  %v312_v0 = vld [vmem:[%s261_s13] sm:$0xcc]  ;;  %v311_v12 = vld [vmem:[%s261_s13] sm:$0x33] }
  0x7d   : > { %v320_v1 = vmul.f32 0.2, %v312_v0  ;;  %s270_s29 = scalar_lea.vmem [#allocation7], %s588_s11  ;;  %v310_v15 = vld [vmem:[#allocation2] sm:$0xff]  ;;  %v313_v17 = vmul.f32 0.1, %v311_v12 }
  0x7e   : > { %v336_v2 = vld [vmem:[%s270_s29] sm:$0xff]  ;;  %v337_v3 = vld [vmem:[%s270_s29 + $0x8] sm:$0xff]  ;;  %v591_v18 = vrot.slane %v310_v15, 10  ;;  %s297_s7 = scalar_lea.vmem [#allocation8], %s587_s28  ;;  %s602_s1 = sshll.u32 %s895_s18, 7 }
  0x7f   : > { %v338_v4 = vrot.slane %v336_v2, 4  ;;  %v321_v5 = vmul.f32 1.442695, %v320_v1  ;;  %v344_v6 = vrot.slane %v337_v3, 4  ;;  %s402_s14 = sshll.u32 %s297_s7, 4  ;;  %s1143_s23 = scalar_lea.hbm %s1225_s3, %s602_s1  ;;  %s1138_s14 = int_to_ptr.vmem [resolvable:$true] %s402_s14 }
  0x80   : > { %v318_v24 = vmul.f32 %v591_v18, %v313_v17  ;;  %s381_s9 = scalar_lea.sflag [#allocation4], %s1123_s26  ;;  %s785_s25 = scalar_lea.vmem %s1138_s14, 128 }
  0x81   : > { %v339_v7 = vmax.f32 %v336_v2, %v338_v4  ;;  %687 = vpow2.f32 %v321_v5  ;;  %v345_v8 = vmax.f32 %v337_v3, %v344_v6  ;;  %p786_p10 = scmp.ne.s32.totalorder %s1138_s14, %s785_s25  ;;  %p1247_p13 = scmp.ne.s32.totalorder %s1237_s5, 0 }
  0x82   : > { %v319_v29 = vadd.f32 %v318_v24, %v310_v15  ;;  %s908_s6 = smov [#allocation8]  }
  0x83   : > { %v340_v9 = vrot.slane %v339_v7, 2  ;;  %v346_v10 = vrot.slane %v345_v8, 2  ;;  %p787_p1 = pnand %p786_p10, %p1247_p13  ;;  %s789_s2 = sshll.u32 %s908_s6, 4  ;;  %s790_s2 = int_to_ptr.vmem [resolvable:$false] %s789_s2 }
  0x84   : > { %s791_s10 = scalar_lea.vmem %s790_s2, 256  ;;  %p792_p4 = scmp.lt.s32.totalorder %s1138_s14, %s790_s2 }
  0x85   : > { %v341_v11 = vmax.f32 %v339_v7, %v340_v9  ;;  %v347_v13 = vmax.f32 %v345_v8, %v346_v10  ;;  %p788_p7 = pneg %p787_p1  ;;  %p793_p0 = scmp.lt.s32.totalorder %s791_s10, %s785_s25 }
  0x87   : > { %v342_v14 = vrot.slane %v341_v11, 1  ;;  %v348_v16 = vrot.slane %v347_v13, 1  ;;  %p794_p3 = por %p793_p0, %p792_p4 }
  0x89   : > { %v343_v19 = vmax.f32 %v341_v11, %v342_v14  ;;  %v349_v20 = vmax.f32 %v347_v13, %v348_v16  ;;  %p795_p2 = pnand %p794_p3, %p788_p7 }
  0x8b   : > { %v350_v21 = vsub.f32 %v336_v2, %v343_v19  ;;  %v688_v22 = vpop.eup %687  ;;  %v351_v23 = vsub.f32 %v337_v3, %v349_v20 }
  0x8c   : > { %v323_v25 = vmul.f32 %v688_v22, %v310_v15 }
  0x8d   : > { %v352_v26 = vmul.f32 1.442695, %v350_v21  ;;  %v354_v27 = vmul.f32 1.442695, %v351_v23 }
  0x8e   : > { %v324_v28 = vmul.f32 0.5, %v323_v25 }
  0x8f   : > { %689 = vpow2.f32 %v352_v26 }
  0x90   : > { %691 = vpow2.f32 %v354_v27  ;;  %v326_v30 = vrot.slane %v324_v28, 6 }
  0x92   : > { %v327_v31 = vrot.slane %v326_v30, 4 }
  0x94   : > { %v329_v32 = vsub.f32 %v319_v29, %v327_v31  ;;  %v331_v33 = vadd.f32 %v327_v31, %v319_v29 }
  0x96   : > { %330 = vst [vmem:[%s297_s7] sm:$0x33] %v329_v32  ;;  %v333_v34 = vrot.slane %v331_v33, 6 }
  0x98   : > { %335 = vst [vmem:[%s297_s7] sm:$0xcc] %v333_v34 }
  0x99   : > { %v690_v35 = vpop.eup %689 }
  0x9a   : > { %v692_v36 = vpop.eup %691  ;;  %v356_v37 = vrot.slane %v690_v35, 4 }
  0x9b   : > { %798 = shalt.err (!%p795_p2)
}
  0x9c   : > { %s799_s24 = scalar_lea.hbm %s1143_s23, 128  ;;  %s803_s13 = scalar_lea.hbm %s1225_s3, 256 }
  0x9d   : > { %p800_p6 = scmp.ne.s32.totalorder %s1143_s23, %s799_s24  ;;  %p804_p8 = scmp.lt.u32.totalorder %s1143_s23, %s1225_s3 }
  0x9e   : > { %p805_p5 = scmp.lt.u32.totalorder %s803_s13, %s799_s24  ;;  %p807_p10 = scmp.lt.u32.totalorder %s799_s24, %s1143_s23 }
  0x9f   : > { %p801_p12 = pnand %p800_p6, %p1247_p13 }
  0xa0   : > { %p806_p11 = por %p805_p5, %p804_p8 }
  0xa1   : > { %p802_p9 = pneg %p801_p12 }
  0xa2   : > { %p808_p1 = por %p807_p10, %p806_p11 }
  0xa4   : > { %p809_p7 = pnand %p808_p1, %p802_p9 }
  0xa6   : > { %812 = shalt.err (!%p809_p7)
}
  0xa7   : > { %612 = dma.vmem_to_hbm [thread:$0]  (%p1247_p13), %s1138_s14, 128, %s1143_s23, %s381_s9   ;;  %v362_v38 = vrot.slane %v692_v36, 4  ;;  %v357_v39 = vadd.f32 %v690_v35, %v356_v37 }
  0xa8   : > { %s304_s14 = scalar_lea.vmem [#allocation9], %s588_s11  ;;  %s603_s30 = sshll.u32 %s895_s18, 8 }
  0xa9   : > { %v363_v40 = vadd.f32 %v692_v36, %v362_v38  ;;  %v358_v41 = vrot.slane %v357_v39, 2  ;;  %s418_s1 = sshll.u32 %s304_s14, 4  ;;  %s1175_s9 = scalar_lea.hbm %s1226_s4, %s603_s30  ;;  %s1170_s1 = int_to_ptr.vmem [resolvable:$true] %s418_s1 }
  0xaa   : > { %s386_s11 = scalar_lea.sflag [#allocation10], %s1123_s26  ;;  %s813_s25 = scalar_lea.vmem %s1170_s1, 256 }
  0xab   : > { %v364_v42 = vrot.slane %v363_v40, 2  ;;  %v359_v43 = vadd.f32 %v358_v41, %v357_v39  ;;  %p814_p4 = scmp.ne.s32.totalorder %s1170_s1, %s813_s25  ;;  %s909_s18 = smov [#allocation9]  }
  0xac   : > { %s817_s6 = sshll.u32 %s909_s18, 4  ;;  %s818_s6 = int_to_ptr.vmem [resolvable:$false] %s817_s6 }
  0xad   : > { %v365_v44 = vadd.f32 %v364_v42, %v363_v40  ;;  %v360_v45 = vrot.slane %v359_v43, 1  ;;  %p815_p0 = pnand %p814_p4, %p1247_p13  ;;  %s819_s2 = scalar_lea.vmem %s818_s6, 512 }
  0xae   : > { %p820_p2 = scmp.lt.s32.totalorder %s1170_s1, %s818_s6  ;;  %p821_p6 = scmp.lt.s32.totalorder %s819_s2, %s813_s25 }
  0xaf   : > { %v366_v46 = vrot.slane %v365_v44, 1  ;;  %v361_v47 = vadd.f32 %v360_v45, %v359_v43  ;;  %p816_p3 = pneg %p815_p0 }
  0xb0   : > { %p822_p12 = por %p821_p6, %p820_p2 }
  0xb1   : > { %v367_v48 = vadd.f32 %v366_v46, %v365_v44  ;;  %693 = vrcp.f32 %v361_v47 }
  0xb2   : > { %p823_p9 = pnand %p822_p12, %p816_p3 }
  0xb3   : > { %695 = vrcp.f32 %v367_v48 }
  0xbb   : > { %v694_v49 = vpop.eup %693 }
  0xbc   : > { %v370_v51 = vmul.f32 %v694_v49, %v361_v47 }
  0xbd   : > { %v696_v50 = vpop.eup %695 }
  0xbe   : > { %v371_v52 = vmul.f32 %v696_v50, %v367_v48  ;;  %v372_v53 = vsub.f32 2.0, %v370_v51 }
  0xc0   : > { %v373_v54 = vsub.f32 2.0, %v371_v52  ;;  %v374_v55 = vmul.f32 %v694_v49, %v372_v53 }
  0xc2   : > { %v375_v56 = vmul.f32 %v696_v50, %v373_v54  ;;  %v376_v57 = vmul.f32 %v690_v35, %v374_v55 }
  0xc4   : > { %v377_v58 = vmul.f32 %v692_v36, %v375_v56  ;;  %378 = vst [vmem:[%s304_s14] sm:$0xff] %v376_v57 }
  0xc6   : > { %379 = vst [vmem:[%s304_s14 + $0x8] sm:$0xff] %v377_v58 }
  0xc7   : > { %826 = shalt.err (!%p823_p9)
}
  0xc8   : > { %s827_s26 = scalar_lea.hbm %s1175_s9, 256  ;;  %s831_s28 = scalar_lea.hbm %s1226_s4, 512 }
  0xc9   : > { %p828_p8 = scmp.ne.s32.totalorder %s1175_s9, %s827_s26  ;;  %p832_p10 = scmp.lt.u32.totalorder %s1175_s9, %s1226_s4 }
  0xca   : > { %p833_p1 = scmp.lt.u32.totalorder %s831_s28, %s827_s26  ;;  %p835_p4 = scmp.lt.u32.totalorder %s827_s26, %s1175_s9 }
  0xcb   : > { %p829_p5 = pnand %p828_p8, %p1247_p13 }
  0xcc   : > { %p834_p7 = por %p833_p1, %p832_p10 }
  0xcd   : > { %p830_p11 = pneg %p829_p5 }
  0xce   : > { %p836_p0 = por %p835_p4, %p834_p7 }
  0xd0   : > { %p837_p3 = pnand %p836_p0, %p830_p11 }
  0xd2   : > { %840 = shalt.err (!%p837_p3)
}
  0xd3   : > { %613 = dma.vmem_to_hbm [thread:$0]  (%p1247_p13), %s1170_s1, 256, %s1175_s9, %s386_s11  }
  0xd4 PF: > { %s430_s29 = sand.u32 1, %s883_s15   ;;  %p1248_p2 = scmp.ne.s32.totalorder %s1238_s8, 0 }
  0xd5   : > { %p1249_p6 = scmp.ge.s32.totalorder %s903_s20, 2  ;;  %s431_s7 = scalar_lea.sflag [#allocation4], %s430_s29 }
  0xd7   : > { %p628_p12 = pnand %p1249_p6, %p1248_p2 }
  0xd9   : > { %874 = dma.done.wait (!%p628_p12), %s431_s7, 128  }
  0xda   : > { %876 = vsyncadd (!%p628_p12), %s431_s7, 4294967168  ;;  %s440_s14 = scalar_lea.sflag [#allocation10], %s430_s29 }
  0xdb   : > { %878 = dma.done.wait (!%p628_p12), %s440_s14, 256  }
  0xdc   : > { %880 = vsyncadd (!%p628_p12), %s440_s14, 4294967040  ;;  %s25_s20 = sadd.s32 1, %s903_s20   ;;  %s1250_s15 = smov %s887_s16 }
  0xdd   : > { %p22_p9 = scmp.ge.s32.totalorder %s25_s20, 4   ;;  %s1251_s16 = smov %s891_s17 }
  0xde   : > { %s1252_s17 = smov %s983_s27  ;;  %s1253_s18 = smov %s899_s19 }
  0xdf   : > { %s1254_s19 = smov %s1256_s21  ;;  %24 = sbr.rel (!%p22_p9) target bundleno = 12 (0xc), region = 111 }
  0xe6   :  { %445 = vsyncpa [#allocation3], 1 }
  0xe7   :  { %447 = vsyncpa [#allocation3 + $0x1], 1 }
  0xe8   :  { %448 = vsyncpa [#allocation6], 1 }
  0xe9   :  { %450 = vsyncpa [#allocation6 + $0x1], 1 }
  0xea   :  { %451 = vsyncpa [#allocation4], 1 }
  0xeb   :  { %453 = vsyncpa [#allocation4 + $0x1], 1 }
  0xec   :  { %454 = vsyncpa [#allocation10], 1 }
  0xed   :  { %456 = vsyncpa [#allocation10 + $0x1], 1 }

</bundles_post_ra>
